<compile_context>
chip_gen: v7x
topology: tpu7x:2x2x1
jax: 0.10.0
libtpu: 0.0.40
codegen_flags: <defaults>
</compile_context>

<pallas_src>
import functools

import jax
import jax.numpy as jnp
from jax.experimental import pallas as pl
from jax.experimental.pallas import tpu as pltpu


def _round_up(x, m):
    return (x + m - 1) // m * m


def _vmem_limit(n_bytes):
    # Computed need + headroom, floored (compiler scratch) and capped so the
    # same tiling still fits v7x's 64 MiB physical VMEM.
    return int(min(max(n_bytes + (2 << 20), 8 << 20), 48 << 20))


# ----------------------------------------------------------------------------
# Pallas kernels
# ----------------------------------------------------------------------------
def _conv_gemm_kernel(w_ref, p_ref, b_ref, o_ref, *, relu):
    # w: [Cout, K] bf16, p: [K, Mtile] bf16, b: [Cout, 1] f32 -> o: [Cout, Mtile]
    y = jnp.dot(w_ref[...], p_ref[...], preferred_element_type=jnp.float32)
    y = y + b_ref[...]
    if relu:
        y = jnp.maximum(y, 0.0)
    o_ref[...] = y.astype(o_ref.dtype)


def _fc_fuse_reparam_kernel(h_ref, w_ref, b_ref, eps_ref, z_ref, acc_ref, *,
                            views):
    # h: [V, Bt, Ft] bf16, w: [Ft, 2C] bf16 (pre-scaled by 1/V),
    # b: [1, 2C] f32, eps: [Bt, C] f32 -> z: [Bt, C] f32; acc: [Bt, 2C] f32.
    f = pl.program_id(1)

    @pl.when(f == 0)
    def _():
        acc_ref[...] = jnp.zeros_like(acc_ref)

    # Consistency fusion (mean over views) commutes with the linear heads:
    # per-view leading-axis indexing -> full-vreg VPU adds, 1/V folded into w.
    h = h_ref[0]
    for v in range(1, views):
        h = h + h_ref[v]
    acc_ref[...] += jnp.dot(h, w_ref[...], preferred_element_type=jnp.float32)

    @pl.when(f == pl.num_programs(1) - 1)
    def _():
        ml = acc_ref[...] + b_ref[...]          # [Bt, 2C] = [mu | logvar]
        c = z_ref.shape[-1]
        mu = ml[:, :c]
        logvar = ml[:, c:]
        std = jnp.exp(0.5 * logvar)             # EUP slot, effectively free
        z_ref[...] = eps_ref[...] * std + mu


# ----------------------------------------------------------------------------
# Pallas wrappers
# ----------------------------------------------------------------------------
def conv_gemm(w2d, patches, bias, relu=True, tile_m=512):
    """o[Cout, M] = relu(w2d[Cout, K] @ patches[K, M] + bias[:, None]).

    Lane-dense [Cout, M] output. M is padded to a tile multiple so every grid
    step is a full, pipelined block. If Cout/K ever scale, pad them toward
    128/256 multiples at weight-prep time instead of reshaping per call.
    """
    Cout, K = w2d.shape
    K2, M = patches.shape
    assert K == K2, (K, K2)
    b2 = bias.reshape(Cout, 1).astype(jnp.float32)

    # Fat tiles: per-grid-step overhead (~0.35us) caps 128-wide tiles near
    # ~30% of the HBM roofline; shrink only for small (padded) M.
    tile = min(tile_m, _round_up(M, 128))
    Mp = _round_up(M, tile)
    if Mp != M:
        patches = jnp.pad(patches, ((0, 0), (0, Mp - M)))
    grid = (Mp // tile,)

    if grid[0] >= 3:
        # Mem-bound loop with tiny compute per byte: deeper pipeline on the
        # streamed operand (cheap VMEM at these K).
        patches_spec = pl.BlockSpec((K, tile), lambda i: (0, i),
                                    pipeline_mode=pl.Buffered(3))
        n_pbuf = 3
    else:
        patches_spec = pl.BlockSpec((K, tile), lambda i: (0, i))
        n_pbuf = 2

    vmem = _vmem_limit(
        2 * (Cout * K * 2 + Cout * 128 * 4)      # weights + bias buffers
        + n_pbuf * (K * tile * 2)                # patches buffers
        + 2 * (Cout * tile * 2))                 # output buffers

    kernel = functools.partial(_conv_gemm_kernel, relu=relu)
    out = pl.pallas_call(
        kernel,
        out_shape=jax.ShapeDtypeStruct((Cout, Mp), jnp.bfloat16),
        grid=grid,
        in_specs=[
            pl.BlockSpec((Cout, K), lambda i: (0, 0)),
            patches_spec,
            pl.BlockSpec((Cout, 1), lambda i: (0, 0)),
        ],
        out_specs=pl.BlockSpec((Cout, tile), lambda i: (0, i)),
        compiler_params=pltpu.CompilerParams(
            dimension_semantics=("parallel",),
            vmem_limit_bytes=vmem,
        ),
    )(w2d, patches, b2)
    return out if Mp == M else out[:, :M]


def fc_fuse_reparam(h3, w_cat, b_cat, eps, tile_b=128, tile_f=512):
    """fc_mu + fc_logvar (one concatenated GEMM) + view fusion + reparam.

    grid = (B tiles ["parallel" -> v7x megacore], F tiles ["arbitrary"
    reduction with an f32 VMEM accumulator]).
    """
    V, B, F = h3.shape
    C2 = w_cat.shape[1]
    C = C2 // 2

    tb = B if (B <= tile_b or B % tile_b) else tile_b
    tf = F if (F <= tile_f or F % tile_f) else tile_f
    grid = (B // tb, F // tf)

    vmem = _vmem_limit(
        2 * (V * tb * tf * 2                      # h blocks
             + tf * C2 * 2                        # weight blocks
             + max(C2, 128) * 4                   # bias
             + tb * max(C, 128) * 4               # eps
             + tb * max(C, 128) * 4)              # output
        + tb * max(C2, 128) * 4)                  # accumulator scratch

    kernel = functools.partial(_fc_fuse_reparam_kernel, views=V)
    return pl.pallas_call(
        kernel,
        out_shape=jax.ShapeDtypeStruct((B, C), jnp.float32),
        grid=grid,
        in_specs=[
            pl.BlockSpec((V, tb, tf), lambda b, f: (0, b, f)),
            pl.BlockSpec((tf, C2), lambda b, f: (f, 0)),
            pl.BlockSpec((1, C2), lambda b, f: (0, 0)),
            pl.BlockSpec((tb, C), lambda b, f: (b, 0)),
        ],
        out_specs=pl.BlockSpec((tb, C), lambda b, f: (b, 0)),
        scratch_shapes=[pltpu.VMEM((tb, C2), jnp.float32)],
        compiler_params=pltpu.CompilerParams(
            dimension_semantics=("parallel", "arbitrary"),
            vmem_limit_bytes=vmem,
        ),
    )(h3, w_cat, b_cat, eps.astype(jnp.float32))


# ----------------------------------------------------------------------------
# Plain-JAX glue (fused by XLA under jit): channel-first im2col.
# ----------------------------------------------------------------------------
def _im2col_cfirst(x_cbhw, kh, kw, stride, pad):
    """x: [C, B, H, W] -> patches [C*kh*kw, B*Ho*Wo]; K=(c,ki,kj), M=(b,ho,wo)."""
    C, B, H, W = x_cbhw.shape
    xp = jnp.pad(x_cbhw, ((0, 0), (0, 0), (pad, pad), (pad, pad)))
    Ho = (H + 2 * pad - kh) // stride + 1
    Wo = (W + 2 * pad - kw) // stride + 1
    cols = []
    for i in range(kh):
        for j in range(kw):
            cols.append(xp[:, :, i:i + stride * Ho:stride,
                              j:j + stride * Wo:stride])
    patches = jnp.stack(cols, axis=1)              # [C, kh*kw, B, Ho, Wo]
    return patches.reshape(C * kh * kw, B * Ho * Wo), Ho, Wo


# ----------------------------------------------------------------------------
# dualvae.forward(Xs) == ConsistencyAE forward -> consistency representation
# ----------------------------------------------------------------------------
@jax.jit
def dualvae_forward(Xs, params, eps):
    V = len(Xs)
    B = Xs[0].shape[0]
    VB = V * B

    # Weight prep hoisted once: bf16 GEMM operands, f32 bias / accumulation.
    w1, w2 = params["w1"], params["w2"]
    c1, c2 = w1.shape[0], w2.shape[0]
    w1_2d = w1.reshape(c1, -1).astype(jnp.bfloat16)
    w2_2d = w2.reshape(c2, -1).astype(jnp.bfloat16)
    # fc_mu & fc_logvar fused into one [F, 2C] operand; 1/V of the view-mean
    # folded into the weights (bias added once).
    w_cat = (jnp.concatenate([params["wmu"], params["wlv"]], axis=1)
             / float(V)).astype(jnp.bfloat16)
    b_cat = jnp.concatenate([params["bmu"], params["blv"]])[None, :]
    b_cat = b_cat.astype(jnp.float32)

    # Both views share the conv encoder: batch them through one GEMM per conv,
    # channel-first so M=(vb,ho,wo) stays lane-dense, no NCHW<->NHWC flips.
    x_all = jnp.concatenate(list(Xs), axis=0)                       # [V*B, Cin, H, W]
    x_cf = jnp.transpose(x_all, (1, 0, 2, 3)).astype(jnp.bfloat16)  # [Cin, V*B, H, W]

    # TODO(synk): patches round-trip HBM (~2.25x input bytes per conv); build
    # them in-kernel from a phase-split padded input once the required
    # (8,128)-crossing reshapes lower robustly.
    p1, H1, W1 = _im2col_cfirst(x_cf, 3, 3, 2, 1)                   # [Cin*9, VB*H1*W1]
    h1 = conv_gemm(w1_2d, p1, params["b1"], relu=True)              # [c1, VB*H1*W1]
    h1 = h1.reshape(c1, VB, H1, W1)

    p2, H2, W2 = _im2col_cfirst(h1, 3, 3, 2, 1)                     # [c1*9, VB*H2*W2]
    h2 = conv_gemm(w2_2d, p2, params["b2"], relu=True)              # [c2, VB*H2*W2]
    h2 = h2.reshape(c2, VB, H2, W2)

    # Per-sample flatten in PyTorch (c, h, w) order, grouped by view.
    h3 = jnp.transpose(h2, (1, 0, 2, 3)).reshape(V, B, -1)          # [V, B, flat]

    # One fused kernel: fc_mu + fc_logvar + consistency fusion + reparameterize.
    return fc_fuse_reparam(h3, w_cat, b_cat, eps)


# ----------------------------------------------------------------------------
# Pure-JAX reference (f32) for a tolerance check.
# ----------------------------------------------------------------------------
def _reference_forward(Xs, params, eps):
    V = len(Xs)

    def conv(x, w, b):
        y = jax.lax.conv_general_dilated(
            x, w, window_strides=(2, 2), padding=((1, 1), (1, 1)),
            dimension_numbers=("NCHW", "OIHW", "NCHW"))
        return jax.nn.relu(y + b[None, :, None, None])

    hs = []
    for x in Xs:
        h = conv(conv(x, params["w1"], params["b1"]), params["w2"], params["b2"])
        hs.append(h.reshape(h.shape[0], -1))
    hbar = sum(hs) / V
    mu = hbar @ params["wmu"] + params["bmu"]
    logvar = hbar @ params["wlv"] + params["blv"]
    return eps * jnp.exp(0.5 * logvar) + mu


# ----------------------------------------------------------------------------
# Main
# ----------------------------------------------------------------------------
if __name__ == "__main__":
    # config-implied small shapes
    B, V = 2, 2                     # batch, config.views
    Cin, H, W = 4, 16, 16           # config.consistency.in_channel, spatial
    hid = 16                        # config.consistency.basic_hidden_dim
    ch_mult = (1, 2)                # config.consistency.ch_mult
    c_dim = 32                      # config.consistency.c_dim

    key = jax.random.PRNGKey(0)
    ks = jax.random.split(key, 8)
    scale = 0.05

    c1, c2 = hid * ch_mult[0], hid * ch_mult[1]
    flat = (H // 4) * (W // 4) * c2

    params = {
        "w1": scale * jax.random.normal(ks[0], (c1, Cin, 3, 3), jnp.float32),
        "b1": jnp.zeros((c1,), jnp.float32),
        "w2": scale * jax.random.normal(ks[1], (c2, c1, 3, 3), jnp.float32),
        "b2": jnp.zeros((c2,), jnp.float32),
        "wmu": scale * jax.random.normal(ks[2], (flat, c_dim), jnp.float32),
        "bmu": jnp.zeros((c_dim,), jnp.float32),
        "wlv": scale * jax.random.normal(ks[3], (flat, c_dim), jnp.float32),
        "blv": jnp.zeros((c_dim,), jnp.float32),
    }

    Xs = tuple(jax.random.normal(ks[4 + i], (B, Cin, H, W), jnp.float32)
               for i in range(V))
    eps = jax.random.normal(ks[6], (B, c_dim), jnp.float32)

    con_repr = jax.block_until_ready(dualvae_forward(Xs, params, eps))
    assert con_repr.shape == (B, c_dim), con_repr.shape
    assert bool(jnp.all(jnp.isfinite(con_repr)))

    ref = _reference_forward(Xs, params, eps)
    max_err = float(jnp.max(jnp.abs(con_repr - ref)))
    assert bool(jnp.allclose(con_repr, ref, rtol=3e-2, atol=3e-2)), max_err

    print("KERNEL_OK")
</pallas_src>

<mosaic_0001>
module attributes {stable_mosaic.version = 11 : i64} {
  func.func @_conv_gemm_kernel(%arg0: i32, %arg1: memref<16x36xbf16, #tpu.memory_space<vmem>>, %arg2: memref<36x256xbf16, #tpu.memory_space<vmem>>, %arg3: memref<16x1xf32, #tpu.memory_space<vmem>>, %arg4: memref<16x256xbf16, #tpu.memory_space<vmem>>) attributes {dimension_semantics = [#tpu.dimension_semantics<parallel>], iteration_bounds = array<i64: 1>, scalar_prefetch = 0 : i64, scratch_operands = 0 : i64, tpu.core_type = #tpu.core_type<tc>, window_params = [{pipeline_mode = #tpu.pipeline_mode<synchronous>, transform_indices = @transform_0, window_bounds = array<i64: 16, 36>}, {transform_indices = @transform_1, window_bounds = array<i64: 36, 256>}, {pipeline_mode = #tpu.pipeline_mode<synchronous>, transform_indices = @transform_2, window_bounds = array<i64: 16, 1>}, {transform_indices = @transform_3, window_bounds = array<i64: 16, 256>}]} {
    %c0 = arith.constant 0 : index
    %c0_0 = arith.constant 0 : index
    %0 = vector.load %arg1[%c0, %c0_0] : memref<16x36xbf16, #tpu.memory_space<vmem>>, vector<16x36xbf16>
    %c0_1 = arith.constant 0 : index
    %c0_2 = arith.constant 0 : index
    %1 = vector.load %arg2[%c0_1, %c0_2] : memref<36x256xbf16, #tpu.memory_space<vmem>>, vector<36x256xbf16>
    %cst = arith.constant dense<0.000000e+00> : vector<16x256xf32>
    %2 = tpu.matmul %0, %1, %cst {dimension_numbers = #tpu.dot_dimension_numbers<[1], [0], [0], [1], [0, 0, 1, 1], [], []>} : vector<16x36xbf16>, vector<36x256xbf16>, vector<16x256xf32> -> vector<16x256xf32>
    %c0_3 = arith.constant 0 : index
    %c0_4 = arith.constant 0 : index
    %3 = vector.load %arg3[%c0_3, %c0_4] : memref<16x1xf32, #tpu.memory_space<vmem>>, vector<16x1xf32>
    %4 = vector.broadcast %3 : vector<16x1xf32> to vector<16x256xf32>
    %5 = arith.addf %2, %4 : vector<16x256xf32>
    %cst_5 = arith.constant 0.000000e+00 : f32
    %6 = vector.broadcast %cst_5 : f32 to vector<16x256xf32>
    %7 = arith.maximumf %5, %6 : vector<16x256xf32>
    %8 = arith.truncf %7 : vector<16x256xf32> to vector<16x256xbf16>
    %c0_6 = arith.constant 0 : index
    %c0_7 = arith.constant 0 : index
    %9 = vector.load %arg4[%c0_6, %c0_7] : memref<16x256xbf16, #tpu.memory_space<vmem>>, vector<16x256xbf16>
    tpu.vector_store %arg4[%c0_6, %c0_7], %8 {strides = array<i32>} : memref<16x256xbf16, #tpu.memory_space<vmem>>, vector<16x256xbf16>,
    return
  }
  func.func @transform_0(%arg0: i32) -> (i32, i32) {
    %c0_i32 = arith.constant 0 : i32
    %c0_i32_0 = arith.constant 0 : i32
    %c0_i32_1 = arith.constant 0 : i32
    return %c0_i32, %c0_i32_0 : i32, i32
  }
  func.func @transform_1(%arg0: i32) -> (i32, i32) {
    %c0_i32 = arith.constant 0 : i32
    %c0_i32_0 = arith.constant 0 : i32
    return %c0_i32, %arg0 : i32, i32
  }
  func.func @transform_2(%arg0: i32) -> (i32, i32) {
    %c0_i32 = arith.constant 0 : i32
    %c0_i32_0 = arith.constant 0 : i32
    %c0_i32_1 = arith.constant 0 : i32
    return %c0_i32, %c0_i32_0 : i32, i32
  }
  func.func @transform_3(%arg0: i32) -> (i32, i32) {
    %c0_i32 = arith.constant 0 : i32
    %c0_i32_0 = arith.constant 0 : i32
    return %c0_i32, %arg0 : i32, i32
  }
}

module attributes {stable_mosaic.version = 11 : i64} {
  func.func @_conv_gemm_kernel(%arg0: i32, %arg1: memref<32x144xbf16, #tpu.memory_space<vmem>>, %arg2: memref<144x128xbf16, #tpu.memory_space<vmem>>, %arg3: memref<32x1xf32, #tpu.memory_space<vmem>>, %arg4: memref<32x128xbf16, #tpu.memory_space<vmem>>) attributes {dimension_semantics = [#tpu.dimension_semantics<parallel>], iteration_bounds = array<i64: 1>, scalar_prefetch = 0 : i64, scratch_operands = 0 : i64, tpu.core_type = #tpu.core_type<tc>, window_params = [{pipeline_mode = #tpu.pipeline_mode<synchronous>, transform_indices = @transform_0, window_bounds = array<i64: 32, 144>}, {transform_indices = @transform_1, window_bounds = array<i64: 144, 128>}, {pipeline_mode = #tpu.pipeline_mode<synchronous>, transform_indices = @transform_2, window_bounds = array<i64: 32, 1>}, {transform_indices = @transform_3, window_bounds = array<i64: 32, 128>}]} {
    %c0 = arith.constant 0 : index
    %c0_0 = arith.constant 0 : index
    %0 = vector.load %arg1[%c0, %c0_0] : memref<32x144xbf16, #tpu.memory_space<vmem>>, vector<32x144xbf16>
    %c0_1 = arith.constant 0 : index
    %c0_2 = arith.constant 0 : index
    %1 = vector.load %arg2[%c0_1, %c0_2] : memref<144x128xbf16, #tpu.memory_space<vmem>>, vector<144x128xbf16>
    %cst = arith.constant dense<0.000000e+00> : vector<32x128xf32>
    %2 = tpu.matmul %0, %1, %cst {dimension_numbers = #tpu.dot_dimension_numbers<[1], [0], [0], [1], [0, 0, 1, 1], [], []>} : vector<32x144xbf16>, vector<144x128xbf16>, vector<32x128xf32> -> vector<32x128xf32>
    %c0_3 = arith.constant 0 : index
    %c0_4 = arith.constant 0 : index
    %3 = vector.load %arg3[%c0_3, %c0_4] : memref<32x1xf32, #tpu.memory_space<vmem>>, vector<32x1xf32>
    %4 = vector.broadcast %3 : vector<32x1xf32> to vector<32x128xf32>
    %5 = arith.addf %2, %4 : vector<32x128xf32>
    %cst_5 = arith.constant 0.000000e+00 : f32
    %6 = vector.broadcast %cst_5 : f32 to vector<32x128xf32>
    %7 = arith.maximumf %5, %6 : vector<32x128xf32>
    %8 = arith.truncf %7 : vector<32x128xf32> to vector<32x128xbf16>
    %c0_6 = arith.constant 0 : index
    %c0_7 = arith.constant 0 : index
    %9 = vector.load %arg4[%c0_6, %c0_7] : memref<32x128xbf16, #tpu.memory_space<vmem>>, vector<32x128xbf16>
    tpu.vector_store %arg4[%c0_6, %c0_7], %8 {strides = array<i32>} : memref<32x128xbf16, #tpu.memory_space<vmem>>, vector<32x128xbf16>,
    return
  }
  func.func @transform_0(%arg0: i32) -> (i32, i32) {
    %c0_i32 = arith.constant 0 : i32
    %c0_i32_0 = arith.constant 0 : i32
    %c0_i32_1 = arith.constant 0 : i32
    return %c0_i32, %c0_i32_0 : i32, i32
  }
  func.func @transform_1(%arg0: i32) -> (i32, i32) {
    %c0_i32 = arith.constant 0 : i32
    %c0_i32_0 = arith.constant 0 : i32
    return %c0_i32, %arg0 : i32, i32
  }
  func.func @transform_2(%arg0: i32) -> (i32, i32) {
    %c0_i32 = arith.constant 0 : i32
    %c0_i32_0 = arith.constant 0 : i32
    %c0_i32_1 = arith.constant 0 : i32
    return %c0_i32, %c0_i32_0 : i32, i32
  }
  func.func @transform_3(%arg0: i32) -> (i32, i32) {
    %c0_i32 = arith.constant 0 : i32
    %c0_i32_0 = arith.constant 0 : i32
    return %c0_i32, %arg0 : i32, i32
  }
}

module attributes {stable_mosaic.version = 11 : i64} {
  func.func @_fc_fuse_reparam_kernel(%arg0: i32, %arg1: i32, %arg2: memref<2x2x512xbf16, #tpu.memory_space<vmem>>, %arg3: memref<512x64xbf16, #tpu.memory_space<vmem>>, %arg4: memref<1x64xf32, #tpu.memory_space<vmem>>, %arg5: memref<2x32xf32, #tpu.memory_space<vmem>>, %arg6: memref<2x32xf32, #tpu.memory_space<vmem>>, %arg7: memref<2x64xf32, #tpu.memory_space<vmem>>) attributes {dimension_semantics = [#tpu.dimension_semantics<parallel>, #tpu.dimension_semantics<arbitrary>], iteration_bounds = array<i64: 1, 1>, scalar_prefetch = 0 : i64, scratch_operands = 1 : i64, tpu.core_type = #tpu.core_type<tc>, window_params = [{transform_indices = @transform_0, window_bounds = array<i64: 2, 2, 512>}, {transform_indices = @transform_1, window_bounds = array<i64: 512, 64>}, {pipeline_mode = #tpu.pipeline_mode<synchronous>, transform_indices = @transform_2, window_bounds = array<i64: 1, 64>}, {transform_indices = @transform_3, window_bounds = array<i64: 2, 32>}, {transform_indices = @transform_4, window_bounds = array<i64: 2, 32>}]} {
    %c0_i32 = arith.constant 0 : i32
    %0 = arith.cmpi eq, %arg1, %c0_i32 : i32
    %1 = arith.extui %0 : i1 to i32
    %c0_i32_0 = arith.constant 0 : i32
    %2 = arith.cmpi ne, %1, %c0_i32_0 : i32
    scf.if %2 {
      %cst_13 = arith.constant 0.000000e+00 : f32
      %16 = vector.broadcast %cst_13 : f32 to vector<2x64xf32>
      %c0_14 = arith.constant 0 : index
      %c0_15 = arith.constant 0 : index
      %17 = vector.load %arg7[%c0_14, %c0_15] : memref<2x64xf32, #tpu.memory_space<vmem>>, vector<2x64xf32>
      tpu.vector_store %arg7[%c0_14, %c0_15], %16 {strides = array<i32>} : memref<2x64xf32, #tpu.memory_space<vmem>>, vector<2x64xf32>,
    } else {
    }
    %c0 = arith.constant 0 : index
    %c0_1 = arith.constant 0 : index
    %c0_2 = arith.constant 0 : index
    %3 = vector.load %arg2[%c0, %c0_1, %c0_2] : memref<2x2x512xbf16, #tpu.memory_space<vmem>>, vector<1x2x512xbf16>
    %4 = vector.shape_cast %3 : vector<1x2x512xbf16> to vector<2x512xbf16>
    %c1 = arith.constant 1 : index
    %c0_3 = arith.constant 0 : index
    %c0_4 = arith.constant 0 : index
    %5 = vector.load %arg2[%c1, %c0_3, %c0_4] : memref<2x2x512xbf16, #tpu.memory_space<vmem>>, vector<1x2x512xbf16>
    %6 = vector.shape_cast %5 : vector<1x2x512xbf16> to vector<2x512xbf16>
    %7 = arith.addf %4, %6 : vector<2x512xbf16>
    %c0_5 = arith.constant 0 : index
    %c0_6 = arith.constant 0 : index
    %8 = vector.load %arg7[%c0_5, %c0_6] : memref<2x64xf32, #tpu.memory_space<vmem>>, vector<2x64xf32>
    %c0_7 = arith.constant 0 : index
    %c0_8 = arith.constant 0 : index
    %9 = vector.load %arg3[%c0_7, %c0_8] : memref<512x64xbf16, #tpu.memory_space<vmem>>, vector<512x64xbf16>
    %cst = arith.constant dense<0.000000e+00> : vector<2x64xf32>
    %10 = tpu.matmul %7, %9, %cst {dimension_numbers = #tpu.dot_dimension_numbers<[1], [0], [0], [1], [0, 0, 1, 1], [], []>} : vector<2x512xbf16>, vector<512x64xbf16>, vector<2x64xf32> -> vector<2x64xf32>
    %11 = arith.addf %8, %10 : vector<2x64xf32>
    %c0_9 = arith.constant 0 : index
    %c0_10 = arith.constant 0 : index
    %12 = vector.load %arg7[%c0_9, %c0_10] : memref<2x64xf32, #tpu.memory_space<vmem>>, vector<2x64xf32>
    tpu.vector_store %arg7[%c0_9, %c0_10], %11 {strides = array<i32>} : memref<2x64xf32, #tpu.memory_space<vmem>>, vector<2x64xf32>,
    %c0_i32_11 = arith.constant 0 : i32
    %13 = arith.cmpi eq, %arg1, %c0_i32_11 : i32
    %14 = arith.extui %13 : i1 to i32
    %c0_i32_12 = arith.constant 0 : i32
    %15 = arith.cmpi ne, %14, %c0_i32_12 : i32
    scf.if %15 {
      %c0_13 = arith.constant 0 : index
      %c0_14 = arith.constant 0 : index
      %16 = vector.load %arg7[%c0_13, %c0_14] : memref<2x64xf32, #tpu.memory_space<vmem>>, vector<2x64xf32>
      %c0_15 = arith.constant 0 : index
      %c0_16 = arith.constant 0 : index
      %17 = vector.load %arg4[%c0_15, %c0_16] : memref<1x64xf32, #tpu.memory_space<vmem>>, vector<1x64xf32>
      %18 = vector.broadcast %17 : vector<1x64xf32> to vector<2x64xf32>
      %19 = arith.addf %16, %18 : vector<2x64xf32>
      %20 = vector.extract_strided_slice %19 {offsets = [0, 0], sizes = [2, 32], strides = [1, 1]} : vector<2x64xf32> to vector<2x32xf32>
      %21 = vector.extract_strided_slice %19 {offsets = [0, 32], sizes = [2, 32], strides = [1, 1]} : vector<2x64xf32> to vector<2x32xf32>
      %cst_17 = arith.constant 5.000000e-01 : f32
      %22 = vector.broadcast %cst_17 : f32 to vector<2x32xf32>
      %23 = arith.mulf %22, %21 : vector<2x32xf32>
      %24 = math.exp %23 : vector<2x32xf32>
      %c0_18 = arith.constant 0 : index
      %c0_19 = arith.constant 0 : index
      %25 = vector.load %arg5[%c0_18, %c0_19] : memref<2x32xf32, #tpu.memory_space<vmem>>, vector<2x32xf32>
      %26 = arith.mulf %25, %24 : vector<2x32xf32>
      %27 = arith.addf %26, %20 : vector<2x32xf32>
      %c0_20 = arith.constant 0 : index
      %c0_21 = arith.constant 0 : index
      %28 = vector.load %arg6[%c0_20, %c0_21] : memref<2x32xf32, #tpu.memory_space<vmem>>, vector<2x32xf32>
      tpu.vector_store %arg6[%c0_20, %c0_21], %27 {strides = array<i32>} : memref<2x32xf32, #tpu.memory_space<vmem>>, vector<2x32xf32>,
    } else {
    }
    return
  }
  func.func @transform_0(%arg0: i32, %arg1: i32) -> (i32, i32, i32) {
    %c0_i32 = arith.constant 0 : i32
    %c0_i32_0 = arith.constant 0 : i32
    return %c0_i32, %arg0, %arg1 : i32, i32, i32
  }
  func.func @transform_1(%arg0: i32, %arg1: i32) -> (i32, i32) {
    %c0_i32 = arith.constant 0 : i32
    %c0_i32_0 = arith.constant 0 : i32
    return %arg1, %c0_i32 : i32, i32
  }
  func.func @transform_2(%arg0: i32, %arg1: i32) -> (i32, i32) {
    %c0_i32 = arith.constant 0 : i32
    %c0_i32_0 = arith.constant 0 : i32
    %c0_i32_1 = arith.constant 0 : i32
    return %c0_i32, %c0_i32_0 : i32, i32
  }
  func.func @transform_3(%arg0: i32, %arg1: i32) -> (i32, i32) {
    %c0_i32 = arith.constant 0 : i32
    %c0_i32_0 = arith.constant 0 : i32
    return %arg0, %c0_i32 : i32, i32
  }
  func.func @transform_4(%arg0: i32, %arg1: i32) -> (i32, i32) {
    %c0_i32 = arith.constant 0 : i32
    %c0_i32_0 = arith.constant 0 : i32
    return %arg0, %c0_i32 : i32, i32
  }
}

</mosaic_0001>

<bundles_post_ra>
// kernel: dualvae_forward.3
= control target key start
LH: loop header
LB: loop body
LE: loop exit
PB: predicated region body
PF: predicated region fallthrough
CT: control target
= control target key end

     0   :  { %v164_v1 = vmov 0   ;;  %vm68_vm0 = vcmask 1041408   ;;  %vm64_vm1 = vcmask 293888   ;;  %s215_s1 = inlined_call_operand.vmem [shape: bf16[36,256], index: 1, kind: input, shape index: {}]   ;;  %s216_s2 = inlined_call_operand.vmem [shape: f32[16,1], index: 2, kind: input, shape index: {}]   ;;  %s217_s0 = inlined_call_operand.vmem [shape: bf16[16,36], index: 0, kind: input, shape index: {}]   ;;  %s218_s3 = inlined_call_operand.vmem [shape: bf16[16,256], index: 3, kind: output, shape index: {}]  }
   0x1   :  { %v155_v0 = vld [vmem:[%s215_s1 + $0x4] ss:$8 sps:$4 sm:$0xff]   ;;  %107 = vmatprep.mubr.bf16.mxu0 %v164_v1  ;;  %154 = vset.pattern.permute.xlu0 %v164_v1  ;;  %v157_v2 = vld [vmem:[%s215_s1] ss:$8 sps:$4 sm:$0xff]   ;;  %v158_v3 = vld [vmem:[%s215_s1 + $0x14] ss:$8 sps:$4 sm:$0xff]  }
   0x2   :  { %75 = vmatprep.subr.bf16.mxu0 %v155_v0  ;;  %v21_v4 = vld [vmem:[%s215_s1 + $0x20] sm:$0x33]  ;;  %v160_v5 = vld [vmem:[%s215_s1 + $0x10] ss:$8 sps:$4 sm:$0xff]   ;;  %v23_v9 = vld [vmem:[%s216_s2 + $0x8] sm:$0xff] }
   0x3   :  { %76 = vmatpush1.bf16.msra.mxu0 %v157_v2  ;;  %v146_v6 = vcombine.high %v21_v4, %v21_v4  ;;  %v145_v7 = vcombine.low %v21_v4, %v21_v4  ;;  %v22_v8 = vld [vmem:[%s216_s2] sm:$0xff] }
   0x4   :  { %77 = vmatprep.subr.bf16.mxu0 %v158_v3  ;;  %26 = vperm.xlu0 %154, %v22_v8   ;;  %v163_v11 = vld [vmem:[%s217_s0] sm:$0xff]  }
   0x5   :  { %v70_v10 = vsel %vm68_vm0, %v145_v7, 0 }
   0x7   :  { %78 = vmatpush1.bf16.msra.mxu0 %v160_v5 }
   0x8   :  { %147 = vmatprep.subr.msk.bf16.mxu0 %vm68_vm0, %v146_v6  ;;  %31 = vperm.xlu0 %154, %v23_v9  }
   0xb   :  { %80 = vmatpush1.bf16.msra.mxu0 %v70_v10 }
   0xe   :  { %148 = vmatmul.mubr.msk.bf16.vlgmr.msra.gmra.mrb[0].mxu0 %vm64_vm1, %v163_v11 }
  0x83   :  { %v27_v12 = vpop.permute.xlu0 %26 }
  0x87   :  { %v32_v16 = vpop.permute.xlu0 %31 }
  0xe1   :  { %v109_v13 = vpop.f32.mrb[0].mxu0 }
  0xe2   :  { %v110_v14 = vadd.f32 %v109_v13, %v27_v12  ;;  %v111_v15 = vpop.f32.mrb[1].mxu0 }
  0xe3   :  { %v112_v17 = vadd.f32 %v111_v15, %v27_v12  ;;  %v113_v18 = vpop.f32.mrb[2].mxu0 }
  0xe4   :  { %v118_v19 = vmax.f32 %v110_v14, 0.0  ;;  %v114_v20 = vadd.f32 %v113_v18, %v32_v16  ;;  %v115_v21 = vpop.f32.mrb[3].mxu0 }
  0xe5   :  { %v119_v22 = vmax.f32 %v112_v17, 0.0  ;;  %v116_v23 = vadd.f32 %v115_v21, %v32_v16 }
  0xe6   :  { %v120_v24 = vmax.f32 %v114_v20, 0.0 }
  0xe7   :  { %v151_v25 = vpack.c.bf16 %v119_v22, %v118_v19  ;;  %v121_v26 = vmax.f32 %v116_v23, 0.0 }
  0xe9   :  { %134 = vst [vmem:[%s218_s3] sm:$0xff] %v151_v25  ;;  %v152_v27 = vpack.c.bf16 %v121_v26, %v120_v24 }
  0xeb   :  { %135 = vst [vmem:[%s218_s3 + $0x8] sm:$0xff] %v152_v27 }

// kernel: dualvae_forward.4
= control target key start
LH: loop header
LB: loop body
LE: loop exit
PB: predicated region body
PF: predicated region fallthrough
CT: control target
= control target key end

     0   :  { %v287_v0 = vmov 0   ;;  %vm133_vm0 = vcmask 130048   ;;  %s365_s1 = inlined_call_operand.vmem [shape: bf16[144,128], index: 1, kind: input, shape index: {}]   ;;  %s366_s0 = inlined_call_operand.vmem [shape: bf16[32,144], index: 0, kind: input, shape index: {}]   ;;  %s367_s2 = inlined_call_operand.vmem [shape: f32[32,1], index: 2, kind: input, shape index: {}]   ;;  %s368_s3 = inlined_call_operand.vmem [shape: bf16[32,128], index: 3, kind: output, shape index: {}]  }
   0x1   :  { %140 = vmatprep.subr.bf16.mxu0 %v287_v0  ;;  %251 = vmatprep.subr.bf16.mxu1 %v287_v0  ;;  %v272_v1 = vld [vmem:[%s365_s1] sm:$0xff]   ;;  %v273_v2 = vld [vmem:[%s365_s1 + $0x8] sm:$0xff]   ;;  %v274_v3 = vld [vmem:[%s365_s1 + $0x10] sm:$0xff]  }
   0x2   :  { %271 = vset.pattern.permute.xlu1 %v287_v0  ;;  %270 = vset.pattern.permute.xlu0 %v287_v0  ;;  %v275_v4 = vld [vmem:[%s365_s1 + $0x18] sm:$0xff]   ;;  %v283_v5 = vld [vmem:[%s366_s0 + $0x4] ss:$8 sps:$4 sm:$0xff]   ;;  %v39_v7 = vld [vmem:[%s367_s2 + $0x10] sm:$0xff] }
   0x3   :  { %141 = vmatpush1.bf16.msra.mxu0 %v272_v1  ;;  %260 = vmatpush1.bf16.msra.mxu1 %v272_v1  ;;  %v286_v6 = vld [vmem:[%s366_s0 + $0x14] ss:$8 sps:$4 sm:$0xff]   ;;  %v37_v8 = vld [vmem:[%s367_s2] sm:$0xff]  ;;  %v38_v11 = vld [vmem:[%s367_s2 + $0x8] sm:$0xff] }
   0x4   :  { %142 = vmatprep.subr.bf16.mxu0 %v287_v0  ;;  %252 = vmatprep.subr.bf16.mxu1 %v287_v0  ;;  %v40_v9 = vld [vmem:[%s367_s2 + $0x18] sm:$0xff]  ;;  %v276_v10 = vld [vmem:[%s365_s1 + $0x20] sm:$0xff]   ;;  %v277_v12 = vld [vmem:[%s365_s1 + $0x28] sm:$0xff]  }
   0x5   :  { %230 = vmatprep.mubr.msk.bf16.mxu0 %vm133_vm0, %v283_v5  ;;  %53 = vperm.xlu1 %271, %v39_v7   ;;  %v278_v13 = vld [vmem:[%s365_s1 + $0x30] sm:$0xff]   ;;  %v279_v14 = vld [vmem:[%s365_s1 + $0x38] sm:$0xff]   ;;  %v280_v15 = vld [vmem:[%s365_s1 + $0x40] sm:$0xff]  }
   0x6   :  { %231 = vmatprep.mubr.msk.bf16.mxu1 %vm133_vm0, %v286_v6  ;;  %43 = vperm.xlu0 %270, %v37_v8   ;;  %v281_v16 = vld [vmem:[%s366_s0] ss:$8 sps:$4 sm:$0xff]   ;;  %v284_v17 = vld [vmem:[%s366_s0 + $0x10] ss:$8 sps:$4 sm:$0xff]  }
   0x7   :  { %143 = vmatpush1.bf16.msra.mxu0 %v273_v2  ;;  %261 = vmatpush1.bf16.msra.mxu1 %v273_v2 }
   0x8   :  { %144 = vmatprep.subr.bf16.mxu0 %v287_v0  ;;  %253 = vmatprep.subr.bf16.mxu1 %v287_v0 }
   0x9   :  { %58 = vperm.xlu1 %271, %v40_v9  }
   0xa   :  { %48 = vperm.xlu0 %270, %v38_v11  }
   0xb   :  { %145 = vmatpush1.bf16.msra.mxu0 %v274_v3  ;;  %262 = vmatpush1.bf16.msra.mxu1 %v274_v3 }
   0xc   :  { %146 = vmatprep.subr.bf16.mxu0 %v287_v0  ;;  %254 = vmatprep.subr.bf16.mxu1 %v287_v0 }
   0xf   :  { %147 = vmatpush1.bf16.msra.mxu0 %v275_v4  ;;  %263 = vmatpush1.bf16.msra.mxu1 %v275_v4 }
  0x10   :  { %148 = vmatprep.subr.bf16.mxu0 %v287_v0  ;;  %255 = vmatprep.subr.bf16.mxu1 %v287_v0 }
  0x13   :  { %149 = vmatpush1.bf16.msra.mxu0 %v276_v10  ;;  %264 = vmatpush1.bf16.msra.mxu1 %v276_v10 }
  0x14   :  { %150 = vmatprep.subr.bf16.mxu0 %v287_v0  ;;  %256 = vmatprep.subr.bf16.mxu1 %v287_v0 }
  0x17   :  { %151 = vmatpush1.bf16.msra.mxu0 %v277_v12  ;;  %265 = vmatpush1.bf16.msra.mxu1 %v277_v12 }
  0x18   :  { %152 = vmatprep.subr.bf16.mxu0 %v287_v0  ;;  %257 = vmatprep.subr.bf16.mxu1 %v287_v0 }
  0x1b   :  { %153 = vmatpush1.bf16.msra.mxu0 %v278_v13  ;;  %266 = vmatpush1.bf16.msra.mxu1 %v278_v13 }
  0x1c   :  { %154 = vmatprep.subr.bf16.mxu0 %v287_v0  ;;  %258 = vmatprep.subr.bf16.mxu1 %v287_v0 }
  0x1f   :  { %155 = vmatpush1.bf16.msra.mxu0 %v279_v14  ;;  %267 = vmatpush1.bf16.msra.mxu1 %v279_v14 }
  0x20   :  { %156 = vmatprep.subr.bf16.mxu0 %v287_v0  ;;  %259 = vmatprep.subr.bf16.mxu1 %v287_v0 }
  0x23   :  { %157 = vmatpush1.bf16.msra.mxu0 %v280_v15  ;;  %268 = vmatpush1.bf16.msra.mxu1 %v280_v15 }
  0x26   :  { %173 = vmatmul.mubr.bf16.vlgmr.msra.gmra.mrb[0].mxu0 %v281_v16  ;;  %181 = vmatmul.mubr.bf16.vlgmr.msra.gmra.mrb[0].mxu1 %v284_v17 }
  0x84   :  { %v54_v18 = vpop.permute.xlu1 %53 }
  0x85   :  { %v44_v19 = vpop.permute.xlu0 %43 }
  0x88   :  { %v59_v20 = vpop.permute.xlu1 %58 }
  0x89   :  { %v49_v21 = vpop.permute.xlu0 %48 }
  0xf9   :  { %v174_v22 = vpop.f32.mrb[0].mxu0  ;;  %v182_v23 = vpop.f32.mrb[0].mxu1 }
  0xfa   :  { %v175_v24 = vadd.f32 %v174_v22, %v44_v19  ;;  %v183_v25 = vadd.f32 %v182_v23, %v54_v18  ;;  %v176_v26 = vpop.f32.mrb[1].mxu0  ;;  %v184_v27 = vpop.f32.mrb[1].mxu1 }
  0xfb   :  { %v177_v28 = vpop.f32.mrb[2].mxu0  ;;  %v185_v29 = vpop.f32.mrb[2].mxu1 }
  0xfc   :  { %v178_v30 = vadd.f32 %v177_v28, %v49_v21  ;;  %v186_v31 = vadd.f32 %v185_v29, %v59_v20  ;;  %v179_v32 = vpop.f32.mrb[3].mxu0  ;;  %v187_v33 = vpop.f32.mrb[3].mxu1  ;;  %v189_v34 = vmax.f32 %v175_v24, 0.0  ;;  %v191_v35 = vmax.f32 %v183_v25, 0.0 }
  0xfe   :  { %v190_v36 = vmax.f32 %v178_v30, 0.0  ;;  %v192_v37 = vmax.f32 %v186_v31, 0.0 }
 0x100   :  { %v243_v38 = vpack.c.bf16 %v190_v36, %v189_v34  ;;  %v248_v39 = vpack.c.bf16 %v192_v37, %v191_v35 }
 0x102   :  { %244 = vst [vmem:[%s368_s3] sm:$0xff] %v243_v38   ;;  %250 = vst [vmem:[%s368_s3 + $0x8] sm:$0xff] %v248_v39  }

// kernel: dualvae_forward.5
= control target key start
LH: loop header
LB: loop body
LE: loop exit
PB: predicated region body
PF: predicated region fallthrough
CT: control target
= control target key end

     0   :  { %v98_v30 = vlaneseq  ;;  %v576_v35 = vmov 1966171168   ;;  %s727_s0 = inlined_call_operand.vmem [shape: bf16[2,2,512], index: 0, kind: input, shape index: {}]   ;;  %s728_s1 = inlined_call_operand.vmem [shape: bf16[512,64], index: 1, kind: input, shape index: {}]   ;;  %s729_s2 = inlined_call_operand.vmem [shape: f32[1,64], index: 2, kind: input, shape index: {}]   ;;  %s730_s3 = inlined_call_operand.vmem [shape: f32[2,32], index: 3, kind: input, shape index: {}]   ;;  %s731_s4 = inlined_call_operand.hbm [shape: f32[2,32], index: 4, kind: output, shape index: {}]  }
   0x1   :  { %v518_v0 = vld [vmem:[%s728_s1 + $0x40] sm:$0xff]   ;;  %v522_v4 = vld [vmem:[%s728_s1 + $0x48] sm:$0xff]   ;;  %v526_v8 = vld [vmem:[%s728_s1 + $0x50] sm:$0xff]   ;;  %v96_v36 = vunpack.c.l.s4 %v576_v35 }
   0x2   :  { %v519_v1 = vld [vmem:[%s728_s1 + $0xc0] sm:$0xff]   ;;  %470 = vmatprep.subr.bf16.mxu0 %v518_v0  ;;  %v523_v5 = vld [vmem:[%s728_s1 + $0xc8] sm:$0xff]   ;;  %v527_v9 = vld [vmem:[%s728_s1 + $0xd0] sm:$0xff]   ;;  %v99_v37 = vshrl.u32 %v98_v30, 7 }
   0x3   :  { %v520_v2 = vld [vmem:[%s728_s1] sm:$0xff]   ;;  %492 = vmatprep.subr.bf16.mxu1 %v519_v1  ;;  %v524_v6 = vld [vmem:[%s728_s1 + $0x8] sm:$0xff]   ;;  %v528_v10 = vld [vmem:[%s728_s1 + $0x10] sm:$0xff]  }
   0x4   :  { %v521_v3 = vld [vmem:[%s728_s1 + $0x80] sm:$0xff]   ;;  %471 = vmatpush3.bf16.msra.mxu0 %v520_v2  ;;  %v525_v7 = vld [vmem:[%s728_s1 + $0x88] sm:$0xff]   ;;  %v529_v11 = vld [vmem:[%s728_s1 + $0x90] sm:$0xff]  }
   0x5   :  { %493 = vmatpush3.bf16.msra.mxu1 %v521_v3  ;;  %472 = vmatprep.subr.bf16.mxu0 %v522_v4  ;;  %v530_v12 = vld [vmem:[%s728_s1 + $0x58] sm:$0xff]   ;;  %v534_v16 = vld [vmem:[%s728_s1 + $0x60] sm:$0xff]   ;;  %v538_v20 = vld [vmem:[%s728_s1 + $0x68] sm:$0xff]  }
   0x6   :  { %494 = vmatprep.subr.bf16.mxu1 %v523_v5  ;;  %v531_v13 = vld [vmem:[%s728_s1 + $0xd8] sm:$0xff]   ;;  %v535_v17 = vld [vmem:[%s728_s1 + $0xe0] sm:$0xff]   ;;  %v539_v21 = vld [vmem:[%s728_s1 + $0xe8] sm:$0xff]  }
   0x7   :  { %v532_v14 = vld [vmem:[%s728_s1 + $0x18] sm:$0xff]   ;;  %v536_v18 = vld [vmem:[%s728_s1 + $0x20] sm:$0xff]   ;;  %v540_v22 = vld [vmem:[%s728_s1 + $0x28] sm:$0xff]  }
   0x8   :  { %473 = vmatpush3.bf16.msra.mxu0 %v524_v6  ;;  %v533_v15 = vld [vmem:[%s728_s1 + $0x98] sm:$0xff]   ;;  %v537_v19 = vld [vmem:[%s728_s1 + $0xa0] sm:$0xff]   ;;  %v541_v23 = vld [vmem:[%s728_s1 + $0xa8] sm:$0xff]  }
   0x9   :  { %495 = vmatpush3.bf16.msra.mxu1 %v525_v7  ;;  %474 = vmatprep.subr.bf16.mxu0 %v526_v8  ;;  %v542_v24 = vld [vmem:[%s728_s1 + $0x70] sm:$0xff]   ;;  %v546_v28 = vld [vmem:[%s728_s1 + $0x78] sm:$0xff]   ;;  %v25_v33 = vld [vmem:[%s727_s0] sm:$0xf] }
   0xa   :  { %496 = vmatprep.subr.bf16.mxu1 %v527_v9  ;;  %v543_v25 = vld [vmem:[%s728_s1 + $0xf0] sm:$0xff]   ;;  %v547_v29 = vld [vmem:[%s728_s1 + $0xf8] sm:$0xff]   ;;  %v436_v34 = vld [vmem:[%s727_s0 + $0x4] sm:$0xf] }
   0xb   :  { %v544_v26 = vld [vmem:[%s728_s1 + $0x30] sm:$0xff]   ;;  %v548_v31 = vld [vmem:[%s728_s1 + $0x38] sm:$0xff]  }
   0xc   :  { %475 = vmatpush3.bf16.msra.mxu0 %v528_v10  ;;  %v545_v27 = vld [vmem:[%s728_s1 + $0xb0] sm:$0xff]   ;;  %v549_v32 = vld [vmem:[%s728_s1 + $0xb8] sm:$0xff]  }
   0xd   :  { %497 = vmatpush3.bf16.msra.mxu1 %v529_v11  ;;  %476 = vmatprep.subr.bf16.mxu0 %v530_v12 }
   0xe   :  { %498 = vmatprep.subr.bf16.mxu1 %v531_v13 }
  0x10   :  { %477 = vmatpush3.bf16.msra.mxu0 %v532_v14 }
  0x11   :  { %499 = vmatpush3.bf16.msra.mxu1 %v533_v15  ;;  %478 = vmatprep.subr.bf16.mxu0 %v534_v16 }
  0x12   :  { %500 = vmatprep.subr.bf16.mxu1 %v535_v17 }
  0x14   :  { %479 = vmatpush3.bf16.msra.mxu0 %v536_v18 }
  0x15   :  { %501 = vmatpush3.bf16.msra.mxu1 %v537_v19  ;;  %480 = vmatprep.subr.bf16.mxu0 %v538_v20 }
  0x16   :  { %502 = vmatprep.subr.bf16.mxu1 %v539_v21 }
  0x18   :  { %481 = vmatpush3.bf16.msra.mxu0 %v540_v22 }
  0x19   :  { %503 = vmatpush3.bf16.msra.mxu1 %v541_v23  ;;  %482 = vmatprep.subr.bf16.mxu0 %v542_v24 }
  0x1a   :  { %504 = vmatprep.subr.bf16.mxu1 %v543_v25 }
  0x1c   :  { %483 = vmatpush3.bf16.msra.mxu0 %v544_v26 }
  0x1d   :  { %505 = vmatpush3.bf16.msra.mxu1 %v545_v27  ;;  %484 = vmatprep.subr.bf16.mxu0 %v546_v28 }
  0x1e   :  { %506 = vmatprep.subr.bf16.mxu1 %v547_v29 }
  0x20   :  { %485 = vmatpush3.bf16.msra.mxu0 %v548_v31 }
  0x21   :  { %507 = vmatpush3.bf16.msra.mxu1 %v549_v32 }
  0x22   :  { %9 = vsyncpa [#allocation4], 0  ;;  %v28_v38 = vadd.bf16 %v436_v34, %v25_v33  ;;  %v97_v39 = vunpack.c.0.s8 %v96_v36  ;;  %vm23_vm0 = vcmask 517120   ;;  %v577_v47 = vmov 0.0   ;;  %v469_v61 = vld [vmem:[%s729_s2] ss:$0 sm:$0xff] }
  0x23   :  { %24 = vst.msk [vmem:[#allocation2] sm:$0x3] %vm23_vm0, %v577_v47  ;;  %s578_s5 = smov 96   ;;  %v413_v3 = vld [vmem:[%s730_s3] sm:$0x3]  ;;  %s579_s8 = smov [#allocation3]  }
  0x24   :  { %v100_v40 = vsub.s32 %v97_v39, %v99_v37  ;;  %s428_s9 = sshll.u32 %s579_s8, 4  ;;  %vm420_vm1 = vcmask 254976   ;;  %s429_s9 = int_to_ptr.vmem [resolvable:$true] %s428_s9 }
  0x25   :  { %s552_s2 = scalar_lea.vmem %s429_s9, 32  ;;  %p557_p1 = scmp.lt.s32.totalorder %s429_s9, %s429_s9 }
  0x26   :  { %v101_v41 = vrot.slane %v28_v38, %v100_v40  ;;  %p553_p0 = scmp.ne.s32.totalorder %s429_s9, %s552_s2  ;;  %p558_p2 = scmp.lt.s32.totalorder %s552_s2, %s552_s2 }
  0x28   :  { %v102_v42 = vcombine.high %v101_v41, %v101_v41  ;;  %v109_v43 = vrot.slane %v101_v41, %v100_v40  ;;  %p559_p3 = por %p558_p2, %p557_p1 }
  0x2a   :  { %v116_v44 = vrot.slane %v102_v42, %v100_v40  ;;  %v117_v45 = vcombine.high %v109_v43, %v109_v43  ;;  %v29_v57 = vld [vmem:[#allocation2] sm:$0x3]  ;;  %p560_p4 = pnand %p559_p3, %p553_p0 }
  0x2c   :  { %347 = vmatprep.mubr.bf16.mxu0 %v116_v44  ;;  %v118_v46 = vcombine.high %v116_v44, %v116_v44 }
  0x2d   :  { %348 = vmatmul.mubr.bf16.vlgmr.msra.gmra.mrb[0].mxu0 %v109_v43 }
  0x2e   :  { %387 = vmatprep.mubr.bf16.mxu1 %v118_v46 }
  0x2f   :  { %388 = vmatmul.mubr.bf16.vlgmr.msra.gmra.mrb[0].mxu1 %v117_v45 }
 0x100   :  { %v486_v48 = vpop.f32.mrb[0].mxu0 }
 0x101   :  { %v487_v49 = vpop.f32.mrb[1].mxu0 }
 0x102   :  { %v508_v50 = vpop.f32.mrb[0].mxu1  ;;  %v488_v51 = vadd.f32 %v487_v49, %v486_v48  ;;  %v489_v52 = vpop.f32.mrb[2].mxu0 }
 0x103   :  { %v509_v53 = vpop.f32.mrb[1].mxu1  ;;  %v490_v54 = vpop.f32.mrb[3].mxu0 }
 0x104   :  { %v510_v55 = vadd.f32 %v509_v53, %v508_v50  ;;  %v511_v56 = vpop.f32.mrb[2].mxu1 }
 0x105   :  { %v512_v58 = vpop.f32.mrb[3].mxu1 }
 0x106   :  { %v390_v59 = vadd.f32 %v510_v55, %v488_v51 }
 0x108   :  { %v395_v60 = vadd.f32 %v390_v59, %v29_v57 }
 0x10a   :  { %397 = vst.msk [vmem:[#allocation2] sm:$0x3] %vm23_vm0, %v395_v60 }
 0x111   :  { %v401_v62 = vld [vmem:[#allocation2] sm:$0x3] }
 0x112   :  { %v409_v63 = vadd.f32 %v469_v61, %v401_v62 }
 0x114   :  { %v410_v0 = vmul.f32 0.5, %v409_v63 }
 0x116   :  { %v411_v1 = vmul.f32 1.442695, %v410_v0 }
 0x118   :  { %550 = vpow2.f32 %v411_v1 }
 0x122   :  { %v551_v2 = vpop.eup %550 }
 0x123   :  { %415 = vrot.lane.b32.xlu0 %v551_v2, %s578_s5 }
 0x195   :  { %v416_v4 = vpop.permute.xlu0 %415 }
 0x196   :  { %v418_v5 = vmul.f32 %v416_v4, %v413_v3 }
 0x198   :  { %v419_v6 = vadd.f32 %v418_v5, %v409_v63 }
 0x19a   :  { %421 = vst.msk [vmem:[#allocation3] sm:$0x3] %vm420_vm1, %v419_v6 }
 0x19b   :  { %563 = shalt.err (!%p560_p4)
}
 0x19c   :  { %s564_s12 = scalar_lea.hbm %s731_s4, 32 }
 0x19d   :  { %p565_p5 = scmp.ne.s32.totalorder %s731_s4, %s564_s12  ;;  %p568_p6 = scmp.lt.u32.totalorder %s564_s12, %s731_s4 }
 0x19f   :  { %p570_p7 = pnand %p568_p6, %p565_p5 }
 0x1a1   :  { %573 = shalt.err (!%p570_p7)
}
 0x1a2   :  { %431 = dma.vmem_to_hbm [thread:$0]  %s429_s9, 32, %s731_s4, [#allocation4]  }
 0x1a3   :  { %574 = dma.done.wait [#allocation4], 32  }
 0x1a4   :  { %575 = vsyncadd [#allocation4], 4294967264 }
 0x1a5   :  { %435 = vsyncpa [#allocation4], 1 }

</bundles_post_ra>
